<compile_context>
chip_gen: v7x
topology: tpu7x:2x2x1
jax: 0.10.0
libtpu: 0.0.40
codegen_flags: <defaults>
</compile_context>

<pallas_src>
import functools

import jax
import jax.numpy as jnp
from jax import lax
from jax.experimental import pallas as pl
from jax.experimental.pallas import tpu as pltpu


# ----------------------------- kernel body ---------------------------------

def layernorm_kernel(x_ref, w_ref, b_ref, o_ref, *, eps, red_axes):
    # x_ref: (bn, M) or (bn, 8, M/8) block.  w_ref/b_ref: matching (1, ...) row.
    x = x_ref[...].astype(jnp.float32)
    mean = jnp.mean(x, axis=red_axes, keepdims=True)            # XLU reduce
    centered = x - mean
    var = jnp.mean(centered * centered, axis=red_axes, keepdims=True)
    inv = lax.rsqrt(var + eps)                                  # EUP rsqrt
    # Row-scalar normalize first, then lane-row affine: avoids keeping a
    # full-tile (inv * w) temporary live (vreg-pressure / spill protection).
    y = (centered * inv) * w_ref[...].astype(jnp.float32) \
        + b_ref[...].astype(jnp.float32)
    o_ref[...] = y.astype(o_ref.dtype)


# --------------------------- tiling heuristics ------------------------------

def _sublane_align(dtype):
    """Native sublane packing: 8 rows f32, 16 bf16/f16, 32 int8/fp8."""
    itemsize = jnp.dtype(dtype).itemsize
    return 8 * max(1, 4 // max(itemsize, 1))


def _tpu_vmem_capacity_bytes():
    """Per-core VMEM capacity; conservative 64 MiB fallback (covers v7x)."""
    try:
        info = pltpu.get_tpu_info()
        cap = getattr(info, "vmem_capacity_bytes", None)
        if cap:
            return int(cap)
    except Exception:
        pass
    return 64 << 20


def _pipeline_budget_and_limit():
    """(in-flight pipeline-buffer budget, explicit scoped-VMEM limit)."""
    vmem = _tpu_vmem_capacity_bytes()
    # v5e/v6e (128 MiB): 48 MiB of buffers; v7x (64 MiB/TC): ~28 MiB.
    budget = max(8 << 20, min(vmem // 2 - (4 << 20), 48 << 20))
    # Explicit limit with headroom for compiler temporaries / spills.
    limit = max(32 << 20, min(vmem - (8 << 20), budget + (16 << 20)))
    return budget, limit


def _block_score(bn, n, row_bytes):
    """Higher is better: big-enough blocks, 4-8 even grid steps."""
    steps = n // bn
    blk = bn * row_bytes
    s = 0.0
    if blk >= (2 << 20):
        s += 4.0
    elif blk >= (1 << 20):
        s += 3.5
    elif blk >= (256 << 10):
        s += 2.0
    if 4 <= steps <= 8:
        s += 3.0
    elif steps >= 2:
        s += 1.0
    if steps % 2 == 0:          # keep both v7x TensorCores busy
        s += 2.0
    s += min(blk, 4 << 20) / float(16 << 20)   # mild tiebreak: bigger block
    return s


def _pick_block_rows_2d(n, row_bytes, budget, align):
    """Best sublane-aligned divisor of n whose in+out double-buffered blocks
    fit the budget; None if no aligned divisor exists."""
    cap = max(1, budget // (4 * row_bytes))
    hi = min(n, cap)
    cands = [bn for bn in range(align, hi + 1, align) if n % bn == 0]
    if not cands:
        return None
    return max(cands, key=lambda bn: _block_score(bn, n, row_bytes))


def _pick_block_rows_any(n, row_bytes, budget):
    """Best divisor of n (no sublane alignment requirement) under the budget."""
    cap = max(1, budget // (4 * row_bytes))
    cands = [bn for bn in range(1, n + 1) if n % bn == 0 and bn <= cap]
    if not cands:
        cands = [1]
    return max(cands, key=lambda bn: _block_score(bn, n, row_bytes))


# ------------------------------- wrapper ------------------------------------

def layer_norm_nchw(x, weight, bias, eps=1e-05):
    """x: (N, C, H, W); weight, bias: (C,). Matches F.layer_norm over dims
    (1,2,3) with per-channel affine (weight/bias broadcast over H, W)."""
    N, C, H, W = x.shape
    HW = H * W
    M = C * HW

    itemsize = jnp.dtype(x.dtype).itemsize
    row_bytes = M * itemsize
    align = _sublane_align(x.dtype)
    budget, vmem_limit = _pipeline_budget_and_limit()

    compiler_params = pltpu.CompilerParams(
        dimension_semantics=("parallel",),
        vmem_limit_bytes=int(vmem_limit),
    )
    cost = pl.CostEstimate(
        flops=int(7 * N * M),
        transcendentals=int(N),
        bytes_accessed=int(2 * N * M * itemsize + 2 * M * 4),
    )

    # Per-channel params expanded once to one lane-dense row (DMA'd once,
    # broadcast across sublanes inside the kernel).
    w_row = jnp.broadcast_to(weight.reshape(C, 1), (C, HW)).reshape(1, M)
    b_row = jnp.broadcast_to(bias.reshape(C, 1), (C, HW)).reshape(1, M)

    bn = _pick_block_rows_2d(N, row_bytes, budget, align)

    if bn is None and M % 8 == 0:
        # Small-N / awkward-N regime: fill all 8 sublanes by folding 8 into
        # the row axis; reduce over the trailing two axes.
        S = 8
        Ms = M // S
        bn3 = _pick_block_rows_any(N, row_bytes, budget)
        out = pl.pallas_call(
            functools.partial(layernorm_kernel, eps=float(eps),
                              red_axes=(-2, -1)),
            out_shape=jax.ShapeDtypeStruct((N, S, Ms), x.dtype),
            grid=(N // bn3,),
            in_specs=[
                pl.BlockSpec((bn3, S, Ms), lambda i: (i, 0, 0)),
                pl.BlockSpec((1, S, Ms), lambda i: (0, 0, 0)),
                pl.BlockSpec((1, S, Ms), lambda i: (0, 0, 0)),
            ],
            out_specs=pl.BlockSpec((bn3, S, Ms), lambda i: (i, 0, 0)),
            compiler_params=compiler_params,
            cost_estimate=cost,
        )(x.reshape(N, S, Ms), w_row.reshape(1, S, Ms), b_row.reshape(1, S, Ms))
        return out.reshape(N, C, H, W)

    if bn is None:
        # TODO(synk): M not divisible by 8 with no aligned batch divisor -> no
        # fully sublane-dense tiling; fall back to whole-array / per-divisor
        # blocks (correct, possibly degraded sublane occupancy).
        bn = N if (2 * N * row_bytes) <= budget else \
            _pick_block_rows_any(N, row_bytes, budget)

    out = pl.pallas_call(
        functools.partial(layernorm_kernel, eps=float(eps), red_axes=(-1,)),
        out_shape=jax.ShapeDtypeStruct((N, M), x.dtype),
        grid=(N // bn,),
        in_specs=[
            pl.BlockSpec((bn, M), lambda i: (i, 0)),
            pl.BlockSpec((1, M), lambda i: (0, 0)),
            pl.BlockSpec((1, M), lambda i: (0, 0)),
        ],
        out_specs=pl.BlockSpec((bn, M), lambda i: (i, 0)),
        compiler_params=compiler_params,
        cost_estimate=cost,
    )(x.reshape(N, M), w_row, b_row)
    return out.reshape(N, C, H, W)


# ------------------------------ reference -----------------------------------

def layer_norm_ref(x, weight, bias, eps=1e-05):
    # Pure-JAX reference (F.layer_norm over dims (1,2,3), per-channel affine).
    mean = jnp.mean(x, axis=(1, 2, 3), keepdims=True)
    var = jnp.mean((x - mean) ** 2, axis=(1, 2, 3), keepdims=True)
    xn = (x - mean) * lax.rsqrt(var + eps)
    return xn * weight[None, :, None, None] + bias[None, :, None, None]


if __name__ == "__main__":
    key = jax.random.PRNGKey(0)
    N, C, H, W = 2, 4, 16, 16

    x = jax.random.normal(key, (N, C, H, W), dtype=jnp.float32)

    # Deterministic params matching the module's __init__ (affine=True):
    # weight = ones(n_out, 1, 1), bias = zeros(n_out, 1, 1)
    weight = jnp.ones((C,), dtype=jnp.float32)
    bias = jnp.zeros((C,), dtype=jnp.float32)

    y = layer_norm_nchw(x, weight, bias)
    jax.block_until_ready(y)

    y_ref = layer_norm_ref(x, weight, bias)
    assert y.shape == (N, C, H, W)
    assert jnp.max(jnp.abs(y - y_ref)) < 1e-4

    print("KERNEL_OK")
</pallas_src>

<mosaic_0001>
module attributes {stable_mosaic.version = 11 : i64} {
  func.func @layernorm_kernel(%arg0: i32, %arg1: memref<1x8x128xf32, #tpu.memory_space<vmem>>, %arg2: memref<1x8x128xf32, #tpu.memory_space<vmem>>, %arg3: memref<1x8x128xf32, #tpu.memory_space<vmem>>, %arg4: memref<1x8x128xf32, #tpu.memory_space<vmem>>) attributes {dimension_semantics = [#tpu.dimension_semantics<parallel>], iteration_bounds = array<i64: 2>, scalar_prefetch = 0 : i64, scratch_operands = 0 : i64, tpu.core_type = #tpu.core_type<tc>, window_params = [{transform_indices = @transform_0, window_bounds = array<i64: 1, 8, 128>}, {pipeline_mode = #tpu.pipeline_mode<synchronous>, transform_indices = @transform_1, window_bounds = array<i64: 1, 8, 128>}, {pipeline_mode = #tpu.pipeline_mode<synchronous>, transform_indices = @transform_2, window_bounds = array<i64: 1, 8, 128>}, {transform_indices = @transform_3, window_bounds = array<i64: 1, 8, 128>}]} {
    %c0 = arith.constant 0 : index
    %c0_0 = arith.constant 0 : index
    %c0_1 = arith.constant 0 : index
    %0 = vector.load %arg1[%c0, %c0_0, %c0_1] : memref<1x8x128xf32, #tpu.memory_space<vmem>>, vector<1x8x128xf32>
    %cst = arith.constant dense<0.000000e+00> : vector<1xf32>
    %1 = vector.multi_reduction <add>, %0, %cst [1, 2] : vector<1x8x128xf32> to vector<1xf32>
    %2 = vector.shape_cast %1 : vector<1xf32> to vector<1x1x1xf32>
    %cst_2 = arith.constant 1.024000e+03 : f32
    %3 = vector.broadcast %cst_2 : f32 to vector<1x1x1xf32>
    %4 = arith.divf %2, %3 : vector<1x1x1xf32>
    %5 = vector.broadcast %4 : vector<1x1x1xf32> to vector<1x8x128xf32>
    %6 = arith.subf %0, %5 : vector<1x8x128xf32>
    %7 = arith.mulf %6, %6 : vector<1x8x128xf32>
    %cst_3 = arith.constant dense<0.000000e+00> : vector<1xf32>
    %8 = vector.multi_reduction <add>, %7, %cst_3 [1, 2] : vector<1x8x128xf32> to vector<1xf32>
    %9 = vector.shape_cast %8 : vector<1xf32> to vector<1x1x1xf32>
    %cst_4 = arith.constant 1.024000e+03 : f32
    %10 = vector.broadcast %cst_4 : f32 to vector<1x1x1xf32>
    %11 = arith.divf %9, %10 : vector<1x1x1xf32>
    %cst_5 = arith.constant 9.99999974E-6 : f32
    %12 = vector.broadcast %cst_5 : f32 to vector<1x1x1xf32>
    %13 = arith.addf %11, %12 : vector<1x1x1xf32>
    %14 = math.rsqrt %13 : vector<1x1x1xf32>
    %15 = vector.broadcast %14 : vector<1x1x1xf32> to vector<1x8x128xf32>
    %16 = arith.mulf %6, %15 : vector<1x8x128xf32>
    %c0_6 = arith.constant 0 : index
    %c0_7 = arith.constant 0 : index
    %c0_8 = arith.constant 0 : index
    %17 = vector.load %arg2[%c0_6, %c0_7, %c0_8] : memref<1x8x128xf32, #tpu.memory_space<vmem>>, vector<1x8x128xf32>
    %18 = arith.mulf %16, %17 : vector<1x8x128xf32>
    %c0_9 = arith.constant 0 : index
    %c0_10 = arith.constant 0 : index
    %c0_11 = arith.constant 0 : index
    %19 = vector.load %arg3[%c0_9, %c0_10, %c0_11] : memref<1x8x128xf32, #tpu.memory_space<vmem>>, vector<1x8x128xf32>
    %20 = arith.addf %18, %19 : vector<1x8x128xf32>
    %c0_12 = arith.constant 0 : index
    %c0_13 = arith.constant 0 : index
    %c0_14 = arith.constant 0 : index
    %21 = vector.load %arg4[%c0_12, %c0_13, %c0_14] : memref<1x8x128xf32, #tpu.memory_space<vmem>>, vector<1x8x128xf32>
    tpu.vector_store %arg4[%c0_12, %c0_13, %c0_14], %20 {strides = array<i32>} : memref<1x8x128xf32, #tpu.memory_space<vmem>>, vector<1x8x128xf32>,
    return
  }
  func.func @transform_0(%arg0: i32) -> (i32, i32, i32) {
    %c0_i32 = arith.constant 0 : i32
    %c0_i32_0 = arith.constant 0 : i32
    %c0_i32_1 = arith.constant 0 : i32
    return %arg0, %c0_i32, %c0_i32_0 : i32, i32, i32
  }
  func.func @transform_1(%arg0: i32) -> (i32, i32, i32) {
    %c0_i32 = arith.constant 0 : i32
    %c0_i32_0 = arith.constant 0 : i32
    %c0_i32_1 = arith.constant 0 : i32
    %c0_i32_2 = arith.constant 0 : i32
    return %c0_i32, %c0_i32_0, %c0_i32_1 : i32, i32, i32
  }
  func.func @transform_2(%arg0: i32) -> (i32, i32, i32) {
    %c0_i32 = arith.constant 0 : i32
    %c0_i32_0 = arith.constant 0 : i32
    %c0_i32_1 = arith.constant 0 : i32
    %c0_i32_2 = arith.constant 0 : i32
    return %c0_i32, %c0_i32_0, %c0_i32_1 : i32, i32, i32
  }
  func.func @transform_3(%arg0: i32) -> (i32, i32, i32) {
    %c0_i32 = arith.constant 0 : i32
    %c0_i32_0 = arith.constant 0 : i32
    %c0_i32_1 = arith.constant 0 : i32
    return %arg0, %c0_i32, %c0_i32_0 : i32, i32, i32
  }
}

</mosaic_0001>

<bundles_post_ra>
// kernel: tpu_custom_call.1
= control target key start
LH: loop header
LB: loop body
LE: loop exit
PB: predicated region body
PF: predicated region fallthrough
CT: control target
= control target key end

     0   :  { %8 = vsyncpa [#allocation3], 0  ;;  %s840_s0 = inlined_call_operand.hbm [shape: f32[2,8,128], index: 0, kind: input, shape index: {}]   ;;  %s841_s1 = inlined_call_operand.hbm [shape: f32[1,8,128], index: 1, kind: input, shape index: {}]   ;;  %s842_s2 = inlined_call_operand.hbm [shape: f32[1,8,128], index: 2, kind: input, shape index: {}]   ;;  %s843_s3 = inlined_call_operand.hbm [shape: f32[2,8,128], index: 3, kind: output, shape index: {}]  }
   0x1   :  { %10 = vsyncpa [#allocation3 + $0x1], 0 }
   0x2   :  { %11 = vsyncpa [#allocation6], 0 }
   0x3   :  { %12 = vsyncpa [#allocation4], 0 }
   0x4   :  { %14 = vsyncpa [#allocation4 + $0x1], 0  ;;  %s611_s12 = smov 0   ;;  %s613_s13 = smov 0  }
   0x5   :  { %s615_s14 = smov 0   ;;  %s617_s15 = smov 0  }
   0x6 LB: > { %s632_s16 = sadd.s32 4294967295, %s585_s15   ;;  %s344_s17 = sadd.s32 4294967294, %s585_s15   ;;  %s585_s15 = sphi %s617_s15, %s863_s15   ;;  %s581_s14 = sphi %s615_s14, %s862_s14   ;;  %s577_s13 = sphi %s613_s13, %s861_s13   ;;  %s573_s12 = sphi %s611_s12, %s860_s12  }
   0x7   : > { %p40_p0 = scmp.ne.s32.totalorder %s577_s13, %s573_s12  ;;  %p844_p1 = scmp.eq.s32.totalorder %s632_s16, 0 }
   0x8   : > { %p112_p3 = scmp.eq.s32.totalorder %s344_s17, 1  ;;  %p345_p5 = scmp.ge.s32.totalorder %s585_s15, 1 }
   0x9   : > { %p641_p4 = por %p844_p1, %p40_p0  ;;  %p119_p7 = scmp.lt.s32.totalorder %s585_s15, 3 }
   0xa   : > { %p646_p6 = por %p112_p3, %p40_p0  ;;  %s587_s21 = smov [#allocation5]  }
   0xb   : > { %s847_s18 = scalar_select %p641_p4, 1, 0 }
   0xc   : > { %s848_s19 = scalar_select %p646_p6, 1, 0 }
   0xd   : > { %p651_p8 = pnand %p345_p5, %p119_p7  ;;  %s132_s22 = sshll.u32 %s587_s21, 4  ;;  %s133_s22 = int_to_ptr.vmem [resolvable:$true] %s132_s22 }
   0xe   : > { %s588_s23 = smov [#allocation7]   ;;  %s667_s26 = sadd.s32 1, %s585_s15  }
   0xf   : > { %s849_s20 = scalar_select %p651_p8, 1, 0 }
  0x10   : > { %p372_p10 = pneg %p651_p8  ;;  %s143_s24 = sshll.u32 %s588_s23, 4  ;;  %s664_s24 = int_to_ptr.vmem [resolvable:$true] %s143_s24 }
  0x11   : > { %s24_s27 = ssub.s32 %s585_s15, %s667_s26  ;;  %s429_s30 = scalar_lea.hbm %s841_s1, 128 }
  0x12   : > { %p660_p11 = pnand %p372_p10, %p844_p1  ;;  %p430_p12 = scmp.ne.s32.totalorder %s841_s1, %s429_s30 }
  0x13   : > { %p436_p5 = scmp.lt.u32.totalorder %s429_s30, %s841_s1 }
  0x14   : > { %p431_p13 = pneg %p660_p11 }
  0x16   : > { %p432_p0 = pnand %p431_p13, %p430_p12 }
  0x18   : > { %p433_p3 = pneg %p432_p0 }
  0x1a   : > { %p438_p7 = pnand %p436_p5, %p433_p3 }
  0x1c   : > { %441 = shalt.err (!%p438_p7)
}
  0x1d   : > { %s442_s8 = scalar_lea.vmem %s133_s22, 128  ;;  %p450_p2 = scmp.lt.s32.totalorder %s133_s22, %s133_s22 }
  0x1e   : > { %p443_p10 = scmp.ne.s32.totalorder %s133_s22, %s442_s8  ;;  %p451_p6 = scmp.lt.s32.totalorder %s442_s8, %s442_s8 }
  0x20   : > { %p445_p9 = pnand %p443_p10, %p431_p13  ;;  %p452_p4 = por %p451_p6, %p450_p2 }
  0x22   : > { %p446_p1 = pneg %p445_p9 }
  0x24   : > { %p453_p8 = pnand %p452_p4, %p446_p1 }
  0x26   : > { %456 = shalt.err (!%p453_p8)
}
  0x27   : > { %375 = dma.hbm_to_vmem [thread:$0]  (!%p660_p11), %s841_s1, 128, %s133_s22, [#allocation6]  }
  0x28   : > { %s457_s21 = scalar_lea.hbm %s842_s2, 128 }
  0x29   : > { %p458_p9 = scmp.ne.s32.totalorder %s842_s2, %s457_s21  ;;  %p464_p4 = scmp.lt.u32.totalorder %s457_s21, %s842_s2 }
  0x2b   : > { %p460_p2 = pnand %p458_p9, %p431_p13 }
  0x2d   : > { %p461_p1 = pneg %p460_p2 }
  0x2f   : > { %p466_p6 = pnand %p464_p4, %p461_p1 }
  0x31   : > { %469 = shalt.err (!%p466_p6)
}
  0x32   : > { %s470_s22 = scalar_lea.vmem %s664_s24, 128  ;;  %p478_p3 = scmp.lt.s32.totalorder %s664_s24, %s664_s24 }
  0x33   : > { %p471_p8 = scmp.ne.s32.totalorder %s664_s24, %s470_s22  ;;  %p479_p5 = scmp.lt.s32.totalorder %s470_s22, %s470_s22 }
  0x35   : > { %p473_p12 = pnand %p471_p8, %p431_p13  ;;  %p480_p7 = por %p479_p5, %p478_p3 }
  0x37   : > { %p474_p0 = pneg %p473_p12 }
  0x39   : > { %p481_p10 = pnand %p480_p7, %p474_p0 }
  0x3b   : > { %484 = shalt.err (!%p481_p10)
}
  0x3c   : > { %378 = dma.hbm_to_vmem [thread:$0]  (!%p660_p11), %s842_s2, 128, %s664_s24, [#allocation6]  }
  0x3d   : > { %p25_p13 = scmp.eq.s32.totalorder %s24_s27, 0  ;;  %s27_s6 = sadd.s32 1, %s581_s14 }
  0x3e   : > { %p34_p9 = scmp.ne.s32.totalorder %s581_s14, %s577_s13  ;;  %p35_p2 = scmp.eq.s32.totalorder %s585_s15, 0 }
  0x3f   : > { %s726_s25 = scalar_select %p25_p13, %s581_s14, %s27_s6  }
  0x40   : > { %p36_p1 = por %p35_p2, %p34_p9  ;;  %p851_p4 = scmp.eq.s32.totalorder %s632_s16, 1 }
  0x41   : > { %p389_p8 = scmp.lt.s32.totalorder %s585_s15, 2  ;;  %s154_s8 = sand.u32 1, %s581_s14  }
  0x42   : > { %p730_p6 = por %p851_p4, %p34_p9  ;;  %s349_s9 = sshll.u32 %s154_s8, 3 }
  0x43   : > { %s350_s10 = sshll.u32 %s585_s15, 7  ;;  %s158_s27 = scalar_lea.vmem [#allocation2], %s349_s9 }
  0x44   : > { %s740_s24 = scalar_lea.hbm %s840_s0, %s350_s10  ;;  %s165_s21 = sshll.u32 %s158_s27, 4  ;;  %s742_s21 = int_to_ptr.vmem [resolvable:$true] %s165_s21 }
  0x45   : > { %p744_p11 = pnand %p389_p8, %p36_p1  ;;  %s155_s28 = scalar_lea.sflag [#allocation3], %s154_s8 }
  0x46   : > { %s485_s29 = scalar_lea.hbm %s740_s24, 128  ;;  %s490_s4 = scalar_lea.hbm %s840_s0, 256 }
  0x47   : > { %p486_p12 = scmp.ne.s32.totalorder %s740_s24, %s485_s29  ;;  %p487_p0 = pneg %p744_p11 }
  0x48   : > { %p491_p7 = scmp.lt.u32.totalorder %s740_s24, %s840_s0  ;;  %p492_p10 = scmp.lt.u32.totalorder %s490_s4, %s485_s29 }
  0x49   : > { %p488_p3 = pnand %p487_p0, %p486_p12  ;;  %p494_p9 = scmp.lt.u32.totalorder %s485_s29, %s740_s24 }
  0x4a   : > { %p493_p13 = por %p492_p10, %p491_p7 }
  0x4b   : > { %p489_p5 = pneg %p488_p3 }
  0x4c   : > { %p495_p2 = por %p494_p9, %p493_p13 }
  0x4e   : > { %p496_p1 = pnand %p495_p2, %p489_p5 }
  0x50   : > { %499 = shalt.err (!%p496_p1)
}
  0x51   : > { %s500_s8 = scalar_lea.vmem %s742_s21, 128  ;;  %s589_s9 = smov [#allocation2]  }
  0x52   : > { %p501_p4 = scmp.ne.s32.totalorder %s742_s21, %s500_s8  ;;  %s505_s10 = sshll.u32 %s589_s9, 4  ;;  %s506_s10 = int_to_ptr.vmem [resolvable:$false] %s505_s10 }
  0x53   : > { %s507_s11 = scalar_lea.vmem %s506_s10, 256  ;;  %p508_p3 = scmp.lt.s32.totalorder %s742_s21, %s506_s10 }
  0x54   : > { %p503_p8 = pnand %p501_p4, %p487_p0  ;;  %p509_p7 = scmp.lt.s32.totalorder %s507_s11, %s500_s8 }
  0x56   : > { %p504_p12 = pneg %p503_p8  ;;  %p510_p10 = por %p509_p7, %p508_p3 }
  0x58   : > { %p511_p13 = pnand %p510_p10, %p504_p12 }
  0x5a   : > { %514 = shalt.err (!%p511_p13)
}
  0x5b   : > { %382 = dma.hbm_to_vmem [thread:$0]  (!%p744_p11), %s740_s24, 128, %s742_s21, %s155_s28  }
  0x5c   : > { %p854_p5 = scmp.ne.s32.totalorder %s849_s20, 0 }
  0x5d   : > { %s776_s17 = sand.u32 (!%p854_p5), 1, %s577_s13   ;;  %p855_p0 = scmp.ne.s32.totalorder (!%p854_p5), %s847_s18, 0 }
  0x5e   : > { %174 = sbr.rel (%p854_p5) target bundleno = 455 (0x1c7), region = 32  ;;  %s352_s27 = sshll.u32 (!%p854_p5), %s776_s17, 3 }
  0x5f   : > { %s177_s29 = scalar_lea.sflag (!%p854_p5), [#allocation3], %s776_s17  ;;  %s180_s30 = scalar_lea.vmem (!%p854_p5), [#allocation2], %s352_s27 }
  0x65   : > { %560 = dma.done.wait (%p855_p0), %s177_s29, 128  }
  0x66   : > { %562 = vsyncadd (%p855_p0), %s177_s29, 4294967168  ;;  %p856_p11 = scmp.eq.s32.totalorder %s632_s16, 0 }
  0x68   : > { %564 = dma.done.wait (%p856_p11), [#allocation6], 256   ;;  %p857_p9 = pmov %p856_p11 }
  0x69   : > { %v211_v0 = vld [vmem:[%s180_s30] sm:$0xff]  ;;  %v236_v21 = vld [vmem:[#allocation5] sm:$0xff]  ;;  %v238_v23 = vld [vmem:[#allocation7] sm:$0xff]  ;;  %s357_s18 = sshll.u32 %s632_s16, 7  ;;  %s210_s20 = scalar_lea.vmem [#allocation8], %s352_s27 }
  0x6a   : > { %566 = vsyncadd (%p857_p9), [#allocation6], 4294967040  ;;  %212 = vadd.xlane.f32.xlu0 %v211_v0  ;;  %s255_s24 = sshll.u32 %s210_s20, 4  ;;  %s796_s28 = scalar_lea.hbm %s843_s3, %s357_s18  ;;  %s798_s24 = int_to_ptr.vmem [resolvable:$true] %s255_s24 }
  0x6b   : > { %s242_s22 = scalar_lea.sflag [#allocation4], %s776_s17  ;;  %s515_s4 = scalar_lea.vmem %s798_s24, 128 }
  0x6c   : > { %p516_p2 = scmp.ne.s32.totalorder %s798_s24, %s515_s4  ;;  %s590_s16 = smov [#allocation8]  }
  0x6d   : > { %s519_s5 = sshll.u32 %s590_s16, 4  ;;  %s520_s5 = int_to_ptr.vmem [resolvable:$false] %s519_s5 }
  0x6e   : > { %p517_p1 = pnand %p516_p2, %p730_p6  ;;  %s521_s6 = scalar_lea.vmem %s520_s5, 256 }
  0x6f   : > { %p522_p8 = scmp.lt.s32.totalorder %s798_s24, %s520_s5  ;;  %p523_p12 = scmp.lt.s32.totalorder %s521_s6, %s515_s4 }
  0x70   : > { %p518_p4 = pneg %p517_p1 }
  0x71   : > { %p524_p3 = por %p523_p12, %p522_p8 }
  0x73   : > { %p525_p7 = pnand %p524_p3, %p518_p4 }
  0xf7   : > { %v213_v1 = vpop.xlane.xlu0 %212 }
  0xf8   : > { %v214_v2 = vrot.slane %v213_v1, 4 }
  0xfa   : > { %v215_v3 = vadd.f32 %v214_v2, %v213_v1 }
  0xfc   : > { %v216_v4 = vrot.slane %v215_v3, 2 }
  0xfe   : > { %v217_v5 = vadd.f32 %v216_v4, %v215_v3 }
 0x100   : > { %v218_v6 = vrot.slane %v217_v5, 1 }
 0x102   : > { %v219_v7 = vadd.f32 %v218_v6, %v217_v5 }
 0x104   : > { %v221_v8 = vmul.f32 0.0009765625, %v219_v7 }
 0x106   : > { %v222_v9 = vsub.f32 %v211_v0, %v221_v8 }
 0x108   : > { %v223_v10 = vmul.f32 %v222_v9, %v222_v9 }
 0x10a   : > { %224 = vadd.xlane.f32.xlu0 %v223_v10 }
 0x197   : > { %v225_v11 = vpop.xlane.xlu0 %224 }
 0x198   : > { %v226_v12 = vrot.slane %v225_v11, 4 }
 0x19a   : > { %v227_v13 = vadd.f32 %v226_v12, %v225_v11 }
 0x19c   : > { %v228_v14 = vrot.slane %v227_v13, 2 }
 0x19e   : > { %v229_v15 = vadd.f32 %v228_v14, %v227_v13 }
 0x1a0   : > { %v230_v16 = vrot.slane %v229_v15, 1 }
 0x1a2   : > { %v231_v17 = vadd.f32 %v230_v16, %v229_v15 }
 0x1a4   : > { %v232_v18 = vmul.f32 0.0009765625, %v231_v17 }
 0x1a6   : > { %v233_v19 = vadd.f32 1e-05, %v232_v18 }
 0x1a8   : > { %427 = vrsqrt.f32 %v233_v19 }
 0x1b2   : > { %v428_v20 = vpop.eup %427 }
 0x1b3   : > { %v235_v22 = vmul.f32 %v428_v20, %v222_v9 }
 0x1b5   : > { %v237_v24 = vmul.f32 %v236_v21, %v235_v22 }
 0x1b7   : > { %v239_v25 = vadd.f32 %v238_v23, %v237_v24 }
 0x1b9   : > { %240 = vst [vmem:[%s210_s20] sm:$0xff] %v239_v25 }
 0x1ba   : > { %528 = shalt.err (!%p525_p7)
}
 0x1bb   : > { %s529_s8 = scalar_lea.hbm %s796_s28, 128  ;;  %s533_s11 = scalar_lea.hbm %s843_s3, 256 }
 0x1bc   : > { %p530_p10 = scmp.ne.s32.totalorder %s796_s28, %s529_s8  ;;  %p534_p0 = scmp.lt.u32.totalorder %s796_s28, %s843_s3 }
 0x1bd   : > { %p535_p11 = scmp.lt.u32.totalorder %s533_s11, %s529_s8  ;;  %p537_p2 = scmp.lt.u32.totalorder %s529_s8, %s796_s28 }
 0x1be   : > { %p531_p13 = pnand %p530_p10, %p730_p6 }
 0x1bf   : > { %p536_p9 = por %p535_p11, %p534_p0 }
 0x1c0   : > { %p532_p5 = pneg %p531_p13 }
 0x1c1   : > { %p538_p1 = por %p537_p2, %p536_p9 }
 0x1c3   : > { %p539_p4 = pnand %p538_p1, %p532_p5 }
 0x1c5   : > { %542 = shalt.err (!%p539_p4)
}
 0x1c6   : > { %370 = dma.vmem_to_hbm [thread:$0]  (%p730_p6), %s798_s24, 128, %s796_s28, %s242_s22  }
 0x1c7 PF: > { %s267_s29 = sand.u32 1, %s573_s12   ;;  %p858_p8 = scmp.ne.s32.totalorder %s848_s19, 0 }
 0x1c8   : > { %p859_p12 = scmp.ge.s32.totalorder %s585_s15, 2  ;;  %s268_s30 = scalar_lea.sflag [#allocation4], %s267_s29 }
 0x1ca   : > { %p384_p3 = pnand %p859_p12, %p858_p8 }
 0x1cc   : > { %568 = dma.done.wait (!%p384_p3), %s268_s30, 128  }
 0x1cd   : > { %570 = vsyncadd (!%p384_p3), %s268_s30, 4294967168  ;;  %p17_p7 = scmp.ge.s32.totalorder %s667_s26, 4   ;;  %s860_s12 = smov %s577_s13 }
 0x1ce   : > { %s861_s13 = smov %s581_s14  ;;  %s862_s14 = smov %s726_s25 }
 0x1cf   : > { %s863_s15 = smov %s667_s26  ;;  %19 = sbr.rel (!%p17_p7) target bundleno = 6 (0x6), region = 85 }
 0x1d6   :  { %273 = vsyncpa [#allocation3], 1 }
 0x1d7   :  { %275 = vsyncpa [#allocation3 + $0x1], 1 }
 0x1d8   :  { %276 = vsyncpa [#allocation6], 1 }
 0x1d9   :  { %277 = vsyncpa [#allocation4], 1 }
 0x1da   :  { %279 = vsyncpa [#allocation4 + $0x1], 1 }

</bundles_post_ra>
